<compile_context>
chip_gen: v7x
topology: tpu7x:2x2x1
jax: 0.10.0
libtpu: 0.0.40
codegen_flags: <defaults>
</compile_context>

<pallas_src>
import enum
import functools
import math

import jax
import jax.numpy as jnp
from jax.experimental import pallas as pl
from jax.experimental.pallas import tpu as pltpu


class Axis(enum.Enum):
    X = 1  # derivative along width  (last axis of NCHW)
    Y = 0  # derivative along height (second-to-last axis of NCHW)


# Per-buffer block target.  Input+output double buffers plus a few f32
# temporaries stay well under v7x's 64 MiB VMEM, and 2 MiB is already on the
# measured HBM-roofline plateau, so bigger blocks on v5e/v6e buy only a few %.
_TARGET_BLOCK_BYTES = 2 * 1024 * 1024
# The flattened-lane path is only used when 8 sublane rows fit the target.
_FLAT_ROW_BYTES_MAX = _TARGET_BLOCK_BYTES // 8
# Only force multi-step grids above this total size (keeps both v7x TCs busy
# on mid-size arrays; tiny arrays are cheaper as a single step).
_SPLIT_MIN_BYTES = 512 * 1024
_MIN_GRID_STEPS = 4
_VMEM_LIMIT_BYTES = 48 * 1024 * 1024


def _roll_ok(sub, lane):
    # Conservative gate: pltpu.roll only on register-tile aligned blocks; the
    # slice+concat fallback lowers for arbitrary shapes and the kernel is
    # HBM-bound either way.
    return sub % 8 == 0 and lane % 128 == 0


def _row_tile(rows, row_bytes):
    """Sublane tile: multiple of 8 (or the full extent), within the block
    budget, and small enough to give >= _MIN_GRID_STEPS grid steps on
    non-tiny inputs (megacore sharding + pipelining)."""
    if rows <= 8:
        return rows
    bt = max(8, (_TARGET_BLOCK_BYTES // max(row_bytes, 1)) // 8 * 8)
    if rows * row_bytes > _SPLIT_MIN_BYTES and rows >= 8 * _MIN_GRID_STEPS:
        bt = min(bt, max(8, (rows // _MIN_GRID_STEPS) // 8 * 8))
    return rows if bt >= rows else bt


def _deriv_kernel(u_ref, o_ref, *, axis, shift, period, use_roll):
    """np.gradient along one block axis, flattened-stride form.

    The derivative axis is embedded in block axis `axis` with inner stride
    `shift` and period `period` (period == shift * n_deriv).  Central
    difference in the interior, one-sided differences at the two boundaries,
    all merged into ONE full-block store via an iota mask.  Compute is f32.
    """
    u = u_ref[...]
    if u.dtype != jnp.float32:
        u = u.astype(jnp.float32)
    n = u.shape[axis]

    if use_roll:
        # Wrapped values at the period boundaries are masked out below.
        left = pltpu.roll(u, shift=shift, axis=axis)        # u[i - shift]
        right = pltpu.roll(u, shift=n - shift, axis=axis)   # u[i + shift]
    else:
        def sl(lo, hi):
            idx = [slice(None)] * u.ndim
            idx[axis] = slice(lo, hi)
            return u[tuple(idx)]
        left = jnp.concatenate([sl(0, shift), sl(0, n - shift)], axis=axis)
        right = jnp.concatenate([sl(shift, n), sl(n - shift, n)], axis=axis)

    pos = jax.lax.broadcasted_iota(jnp.int32, u.shape, axis)
    if n != period:
        pos = pos % period               # several periods packed along `axis`
    first = pos < shift                  # derivative index 0
    last = pos >= period - shift         # derivative index n_deriv - 1

    central = (right - left) * 0.5
    out = jnp.where(first, right - u, jnp.where(last, u - left, central))
    o_ref[...] = out.astype(o_ref.dtype)


def _flatten_plan(u, rows, length, shift, *, force):
    """View the array as (rows, length) with the derivative axis folded into
    the lane axis (inner stride `shift`).  If `length` is not a multiple of
    128, pack k = lcm(length,128)//length rows into one block row (a pure
    contiguous reshape, no transpose) so the output store is lane-dense."""
    itemsize = jnp.dtype(u.dtype).itemsize
    k = 1
    if length % 128 != 0:
        k = math.lcm(length, 128) // length
        if rows % k != 0:
            k = 1                        # cannot pack evenly; keep narrow lanes
    lane = length * k
    if not force and lane * itemsize > _FLAT_ROW_BYTES_MAX:
        return None                      # one row alone would blow the budget
    # TODO(synk): for extremely wide W on Axis.X (force path), a lane-tiled
    # variant with a 1-element halo would bound block size; not needed for
    # realistic NCHW widths.
    rows_p = rows // k
    v = u.reshape(rows_p, lane)
    bt = _row_tile(rows_p, lane * itemsize)
    kernel = functools.partial(
        _deriv_kernel, axis=1, shift=shift, period=length,
        use_roll=_roll_ok(bt, lane))
    grid = (pl.cdiv(rows_p, bt),)
    spec = pl.BlockSpec((bt, lane), lambda i: (i, 0))
    return v, kernel, grid, spec, ("parallel",)


def _image_plan(u):
    """Axis.Y plan for images too large to flatten: blocks of (Nt, H, Wt) with
    the derivative axis H whole on sublanes and W tiled on lanes; Nt images
    are grouped per block to amortize per-step overhead."""
    B, C, H, W = u.shape
    itemsize = jnp.dtype(u.dtype).itemsize
    N = B * C
    v = u.reshape(N, H, W)

    col_bytes = H * itemsize
    if W % 128 == 0 and W * col_bytes > _TARGET_BLOCK_BYTES:
        Wt = min(W, max(128, (_TARGET_BLOCK_BYTES // col_bytes) // 128 * 128))
    else:
        Wt = W   # lanes already fit, or cannot be tiled (W % 128 != 0)
    # TODO(synk): for very tall images an H-tiled path with a 1-row halo would
    # bound the block size independently of H; not needed for typical sizes.

    img_bytes = H * Wt * itemsize
    Nt = max(1, min(N, _TARGET_BLOCK_BYTES // max(img_bytes, 1)))
    total_bytes = N * H * W * itemsize
    if total_bytes > _SPLIT_MIN_BYTES:
        while Nt > 1 and pl.cdiv(N, Nt) * pl.cdiv(W, Wt) < _MIN_GRID_STEPS:
            Nt = max(1, Nt // 2)

    kernel = functools.partial(
        _deriv_kernel, axis=1, shift=1, period=H, use_roll=_roll_ok(H, Wt))
    grid = (pl.cdiv(N, Nt), pl.cdiv(W, Wt))
    spec = pl.BlockSpec((Nt, H, Wt), lambda i, j: (i, 0, j))
    return v, kernel, grid, spec, ("parallel", "parallel")


def derivative(u: jax.Array, axis: Axis) -> jax.Array:
    """Spatial derivative of an NCHW tensor `u` along `axis`
    (np.gradient semantics: central interior, one-sided edges)."""
    if u.ndim != 4:
        raise ValueError("expected NCHW input")
    B, C, H, W = u.shape
    n = W if axis == Axis.X else H
    if n < 2:
        # np.gradient needs >= 2 samples; keep the degenerate case deterministic.
        return jnp.zeros_like(u)

    if axis == Axis.X:
        plan = _flatten_plan(u, rows=B * C * H, length=W, shift=1, force=True)
    else:
        plan = _flatten_plan(u, rows=B * C, length=H * W, shift=W, force=False)
        if plan is None:
            plan = _image_plan(u)

    v, kernel, grid, spec, dims = plan
    out = pl.pallas_call(
        kernel,
        out_shape=jax.ShapeDtypeStruct(v.shape, u.dtype),
        grid=grid,
        in_specs=[spec],
        out_specs=spec,
        compiler_params=pltpu.CompilerParams(
            dimension_semantics=dims,
            vmem_limit_bytes=_VMEM_LIMIT_BYTES,
        ),
    )(v)
    return out.reshape(u.shape)


def _reference(u: jax.Array, axis: Axis) -> jax.Array:
    """Pure-JAX reference (np.gradient along the chosen spatial axis, f32 math)."""
    ax = 3 if axis == Axis.X else 2
    return jnp.gradient(u.astype(jnp.float32), axis=ax).astype(u.dtype)


if __name__ == "__main__":
    key = jax.random.PRNGKey(0)
    k1, k2, k3 = jax.random.split(key, 3)

    # Small NCHW case from the module spec: W=16 exercises the lane-packing
    # reshape (16 -> 128 lanes) on Axis.X and the H*W=256 flattened-lane path
    # (shift=W roll) on Axis.Y.
    u_small = jax.random.normal(k1, (2, 4, 16, 16), dtype=jnp.float32)
    # Lane-aligned case: no packing needed on Axis.X; Axis.Y takes the
    # slice+concat fallback (6 packed rows, not register-tile aligned).
    u_aligned = jax.random.normal(k2, (2, 3, 16, 128), dtype=jnp.float32)
    # bf16 case: verifies the in-kernel f32 upcast path.
    u_bf16 = jax.random.normal(k3, (2, 4, 16, 16), dtype=jnp.bfloat16)

    for u in (u_small, u_aligned, u_bf16):
        for ax in (Axis.X, Axis.Y):
            out = jax.block_until_ready(derivative(u, ax))
            ref = _reference(u, ax)
            assert out.shape == u.shape and out.dtype == u.dtype, (u.shape, ax)
            tol = 1e-5 if u.dtype == jnp.float32 else 1e-2
            assert jnp.allclose(out.astype(jnp.float32), ref.astype(jnp.float32),
                                atol=tol, rtol=tol), (u.shape, str(u.dtype), ax)

    print("KERNEL_OK")
</pallas_src>

<mosaic_0001>
module attributes {stable_mosaic.version = 11 : i64} {
  func.func @_deriv_kernel(%arg0: i32, %arg1: memref<16x128xf32, #tpu.memory_space<vmem>>, %arg2: memref<16x128xf32, #tpu.memory_space<vmem>>) attributes {dimension_semantics = [#tpu.dimension_semantics<parallel>], iteration_bounds = array<i64: 1>, scalar_prefetch = 0 : i64, scratch_operands = 0 : i64, tpu.core_type = #tpu.core_type<tc>, window_params = [{transform_indices = @transform_0, window_bounds = array<i64: 16, 128>}, {transform_indices = @transform_1, window_bounds = array<i64: 16, 128>}]} {
    %c0 = arith.constant 0 : index
    %c0_0 = arith.constant 0 : index
    %0 = vector.load %arg1[%c0, %c0_0] : memref<16x128xf32, #tpu.memory_space<vmem>>, vector<16x128xf32>
    %c1_i32 = arith.constant 1 : i32
    %1 = tpu.dynamic_rotate %0 by %c1_i32 dim 1 : vector<16x128xf32>, i32 -> vector<16x128xf32>
    %c127_i32 = arith.constant 127 : i32
    %2 = tpu.dynamic_rotate %0 by %c127_i32 dim 1 : vector<16x128xf32>, i32 -> vector<16x128xf32>
    %3 = tpu.iota {dimensions = array<i32: 1>} : vector<16x128xi32>
    %c16_i32 = arith.constant 16 : i32
    %c0_i32 = arith.constant 0 : i32
    %4 = arith.cmpi eq, %c16_i32, %c0_i32 : i32
    %c1_i32_1 = arith.constant 1 : i32
    %5 = arith.select %4, %c1_i32_1, %c16_i32 : i32
    %6 = vector.broadcast %5 : i32 to vector<16x128xi32>
    %7 = arith.remsi %3, %6 : vector<16x128xi32>
    %c0_i32_2 = arith.constant 0 : i32
    %8 = vector.broadcast %c0_i32_2 : i32 to vector<16x128xi32>
    %9 = arith.cmpi ne, %7, %8 : vector<16x128xi32>
    %c0_i32_3 = arith.constant 0 : i32
    %10 = vector.broadcast %c0_i32_3 : i32 to vector<16x128xi32>
    %11 = arith.cmpi slt, %7, %10 : vector<16x128xi32>
    %c0_i32_4 = arith.constant 0 : i32
    %12 = arith.cmpi slt, %5, %c0_i32_4 : i32
    %13 = vector.broadcast %12 : i1 to vector<16x128xi1>
    %14 = vector.broadcast %13 : vector<16x128xi1> to vector<16x128xi1>
    %15 = arith.xori %11, %14 : vector<16x128xi1>
    %16 = arith.andi %15, %9 : vector<16x128xi1>
    %17 = vector.broadcast %5 : i32 to vector<16x128xi32>
    %18 = arith.addi %7, %17 : vector<16x128xi32>
    %19 = arith.select %16, %18, %7 : vector<16x128xi1>, vector<16x128xi32>
    %c1_i32_5 = arith.constant 1 : i32
    %20 = vector.broadcast %c1_i32_5 : i32 to vector<16x128xi32>
    %21 = arith.cmpi slt, %19, %20 : vector<16x128xi32>
    %c15_i32 = arith.constant 15 : i32
    %22 = vector.broadcast %c15_i32 : i32 to vector<16x128xi32>
    %23 = arith.cmpi sge, %19, %22 : vector<16x128xi32>
    %24 = arith.subf %2, %1 : vector<16x128xf32>
    %cst = arith.constant 5.000000e-01 : f32
    %25 = vector.broadcast %cst : f32 to vector<16x128xf32>
    %26 = arith.mulf %24, %25 : vector<16x128xf32>
    %27 = arith.subf %2, %0 : vector<16x128xf32>
    %28 = arith.subf %0, %1 : vector<16x128xf32>
    %29 = arith.select %23, %28, %26 : vector<16x128xi1>, vector<16x128xf32>
    %30 = arith.select %21, %27, %29 : vector<16x128xi1>, vector<16x128xf32>
    %c0_6 = arith.constant 0 : index
    %c0_7 = arith.constant 0 : index
    %31 = vector.load %arg2[%c0_6, %c0_7] : memref<16x128xf32, #tpu.memory_space<vmem>>, vector<16x128xf32>
    tpu.vector_store %arg2[%c0_6, %c0_7], %30 {strides = array<i32>} : memref<16x128xf32, #tpu.memory_space<vmem>>, vector<16x128xf32>,
    return
  }
  func.func @transform_0(%arg0: i32) -> (i32, i32) {
    %c0_i32 = arith.constant 0 : i32
    %c0_i32_0 = arith.constant 0 : i32
    return %arg0, %c0_i32 : i32, i32
  }
  func.func @transform_1(%arg0: i32) -> (i32, i32) {
    %c0_i32 = arith.constant 0 : i32
    %c0_i32_0 = arith.constant 0 : i32
    return %arg0, %c0_i32 : i32, i32
  }
}

</mosaic_0001>

<bundles_post_ra>
// kernel: tpu_custom_call.1
= control target key start
LH: loop header
LB: loop body
LE: loop exit
PB: predicated region body
PF: predicated region fallthrough
CT: control target
= control target key end

     0   :  { %6 = vsyncpa [#allocation3], 0  ;;  %s188_s0 = inlined_call_operand.hbm [shape: f32[16,128], index: 0, kind: input, shape index: {}]   ;;  %s189_s1 = inlined_call_operand.hbm [shape: f32[16,128], index: 1, kind: output, shape index: {}]  }
   0x1   :  { %7 = vsyncpa [#allocation4], 0  ;;  %s134_s6 = smov [#allocation2]   ;;  %s86_s10 = scalar_lea.hbm %s188_s0, 256 }
   0x2   :  { %s13_s7 = sshll.u32 %s134_s6, 4  ;;  %p87_p0 = scmp.ne.s32.totalorder %s188_s0, %s86_s10  ;;  %s14_s7 = int_to_ptr.vmem [resolvable:$true] %s13_s7 }
   0x3   :  { %p90_p1 = scmp.lt.u32.totalorder %s86_s10, %s188_s0 }
   0x5   :  { %p92_p2 = pnand %p90_p1, %p87_p0 }
   0x7   :  { %95 = shalt.err (!%p92_p2)
}
   0x8   :  { %s96_s15 = scalar_lea.vmem %s14_s7, 256  ;;  %p101_p4 = scmp.lt.s32.totalorder %s14_s7, %s14_s7 }
   0x9   :  { %p97_p3 = scmp.ne.s32.totalorder %s14_s7, %s96_s15  ;;  %p102_p5 = scmp.lt.s32.totalorder %s96_s15, %s96_s15 }
   0xb   :  { %p103_p6 = por %p102_p5, %p101_p4 }
   0xd   :  { %p104_p7 = pnand %p103_p6, %p97_p3 }
   0xf   :  { %107 = shalt.err (!%p104_p7)
}
  0x10   :  { %s135_s16 = smov 128   ;;  %s136_s17 = smov 8  }
  0x11   :  { %19 = dma.hbm_to_vmem [thread:$0]  %s188_s0, 256, %s14_s7, [#allocation3], %s135_s16, %s135_s16, %s136_s17  }
  0x12   :  { %130 = dma.done.wait [#allocation3], 256  }
  0x13   :  { %131 = vsyncadd [#allocation3], 4294967040  ;;  %v23_v0 = vld [vmem:[#allocation2] sm:$0xff]  ;;  %s137_s20 = smov 127   ;;  %s138_s21 = smov 1   ;;  %v24_v1 = vld [vmem:[#allocation2 + $0x8] sm:$0xff]  ;;  %v33_v2 = vlaneseq }
  0x14   :  { %29 = vrot.lane.b32.xlu1 %v23_v0, %s137_s20  ;;  %25 = vrot.lane.b32.xlu0 %v23_v0, %s138_s21  ;;  %s139_s0 = smov [#allocation5]  }
  0x15   :  { %v34_v3 = vand.u32 127, %v33_v2  ;;  %s68_s22 = sshll.u32 %s139_s0, 4  ;;  %s69_s22 = int_to_ptr.vmem [resolvable:$true] %s68_s22 }
  0x16   :  { %s108_s23 = scalar_lea.vmem %s69_s22, 256  ;;  %p113_p9 = scmp.lt.s32.totalorder %s69_s22, %s69_s22 }
  0x17   :  { %v39_v4 = vand.u32 15, %v34_v3  ;;  %p109_p8 = scmp.ne.s32.totalorder %s69_s22, %s108_s23  ;;  %p114_p10 = scmp.lt.s32.totalorder %s108_s23, %s108_s23 }
  0x18   :  { %31 = vrot.lane.b32.xlu1 %v24_v1, %s137_s20  ;;  %27 = vrot.lane.b32.xlu0 %v24_v1, %s138_s21 }
  0x19   :  { %vm165_vm0 = vcmp.ge.s32.totalorder %v39_v4, 15  ;;  %vm47_vm1 = vcmp.lt.s32.totalorder %v39_v4, 1  ;;  %p115_p11 = por %p114_p10, %p113_p9 }
  0x1b   :  { %p116_p12 = pnand %p115_p11, %p109_p8 }
  0x86   :  { %v30_v5 = vpop.permute.xlu1 %29  ;;  %v26_v6 = vpop.permute.xlu0 %25 }
  0x87   :  { %v49_v7 = vsub.f32 %v30_v5, %v26_v6  ;;  %v55_v10 = vsub.f32 %v23_v0, %v26_v6  ;;  %v53_v11 = vsub.f32 %v30_v5, %v23_v0 }
  0x89   :  { %v51_v9 = vmul.f32 0.5, %v49_v7 }
  0x8a   :  { %v32_v12 = vpop.permute.xlu1 %31  ;;  %v28_v13 = vpop.permute.xlu0 %27 }
  0x8b   :  { %v57_v14 = vsel %vm165_vm0, %v55_v10, %v51_v9  ;;  %v50_v15 = vsub.f32 %v32_v12, %v28_v13  ;;  %v56_v18 = vsub.f32 %v24_v1, %v28_v13  ;;  %v54_v19 = vsub.f32 %v32_v12, %v24_v1 }
  0x8c   :  { %v59_v16 = vsel %vm47_vm1, %v53_v11, %v57_v14 }
  0x8d   :  { %v52_v17 = vmul.f32 0.5, %v50_v15  ;;  %61 = vst [vmem:[#allocation5] sm:$0xff] %v59_v16 }
  0x8f   :  { %v58_v20 = vsel %vm165_vm0, %v56_v18, %v52_v17 }
  0x90   :  { %v60_v21 = vsel %vm47_vm1, %v54_v19, %v58_v20 }
  0x91   :  { %62 = vst [vmem:[#allocation5 + $0x8] sm:$0xff] %v60_v21 }
  0x92   :  { %119 = shalt.err (!%p116_p12)
}
  0x93   :  { %s120_s26 = scalar_lea.hbm %s189_s1, 256 }
  0x94   :  { %p121_p13 = scmp.ne.s32.totalorder %s189_s1, %s120_s26  ;;  %p124_p0 = scmp.lt.u32.totalorder %s120_s26, %s189_s1 }
  0x96   :  { %p126_p1 = pnand %p124_p0, %p121_p13 }
  0x98   :  { %129 = shalt.err (!%p126_p1)
}
  0x99   :  { %74 = dma.vmem_to_hbm [thread:$0]  %s69_s22, 256, %s189_s1, [#allocation4], %s135_s16, %s135_s16, %s136_s17  }
  0x9a   :  { %132 = dma.done.wait [#allocation4], 256  }
  0x9b   :  { %133 = vsyncadd [#allocation4], 4294967040 }
  0x9c   :  { %78 = vsyncpa [#allocation3], 1 }
  0x9d   :  { %79 = vsyncpa [#allocation4], 1 }

</bundles_post_ra>
